<compile_context>
chip_gen: v6e
topology: v6e:2x2x1
jax: 0.10.0
libtpu: 0.0.40
codegen_flags: <defaults>
</compile_context>

<pallas_src>
import functools

import jax
import jax.numpy as jnp
from jax import lax
from jax.experimental import pallas as pl
from jax.experimental.pallas import tpu as pltpu

EPS = 1e-5                  # PyTorch InstanceNorm default eps
KH = KW = 3                 # kernel_size = 3, padding = 1, stride = 1
MXU_DTYPE = jnp.bfloat16    # MXU operand dtype (accumulation & norm math in f32)
CH_ALIGN = 8                # channel (sublane) alignment


def _round_up(x, m):
    return (x + m - 1) // m * m


def _res_basic_kernel(x_ref, w1_ref, g1_ref, be1_ref, w2_ref, g2_ref, be2_ref,
                      mask_ref, out_ref, *, H, W, Wp, Lp, NB):
    """One grid step: NB images through conv1+IN1+ReLU, conv2+IN2, +residual, ReLU."""
    T = NB * Lp
    inv_hw = 1.0 / float(H * W)

    x = x_ref[...]                          # (Cp, T) f32 — also the identity residual
    mask = mask_ref[...]                    # (1, Lp) f32, 1.0 on the H*W valid lanes
    w1 = w1_ref[...]                        # (Cp, 9*Cp)  bf16
    w2 = w2_ref[...]
    g1, be1 = g1_ref[...], be1_ref[...]     # (Cp, 1) f32
    g2, be2 = g2_ref[...], be2_ref[...]

    def im2col(z):
        # Tap (kh, kw) of a 3x3 conv on the padded-flat plane is the slab rolled
        # by -((kh-1)*Wp + (kw-1)) lanes (np.roll semantics).  Valid output lanes
        # never wrap across image / plane boundaries; pad lanes are masked later.
        pieces = []
        for kh in range(KH):
            for kw in range(KW):
                delta = (kh - 1) * Wp + (kw - 1)
                pieces.append(z if delta == 0
                              else pltpu.roll(z, (-delta) % T, axis=1))
        # f32 concat (sublane-aligned pieces), one cast to the MXU operand dtype.
        return jnp.concatenate(pieces, axis=0).astype(MXU_DTYPE)    # (9*Cp, T)

    def inorm(acc, g, be, relu, zero_pad_lanes):
        # Per-image InstanceNorm over the valid H*W lanes of each Lp segment.
        outs = []
        for n in range(NB):
            a = acc[:, n * Lp:(n + 1) * Lp]                 # lane-aligned slice
            mean = jnp.sum(a * mask, axis=1, keepdims=True) * inv_hw
            centered = a - mean
            cm = centered * mask
            var = jnp.sum(cm * cm, axis=1, keepdims=True) * inv_hw
            scale = lax.rsqrt(var + EPS) * g                # gamma folded, (Cp, 1)
            y = centered * scale + be
            if relu:
                y = jnp.maximum(y, 0.0)
            if zero_pad_lanes:                              # conv2 needs a zero ring
                y = y * mask
            outs.append(y)
        return outs[0] if NB == 1 else jnp.concatenate(outs, axis=1)

    # conv1: one fused big-K MXU matmul over all NB images, then IN1 + ReLU.
    # Conv biases are omitted: exactly cancelled by the IN mean subtraction.
    acc1 = jnp.dot(w1, im2col(x), preferred_element_type=jnp.float32)
    out1 = inorm(acc1, g1, be1, relu=True, zero_pad_lanes=True)

    # conv2 directly from the live, zero-ringed out1 (no scratch round trip).
    acc2 = jnp.dot(w2, im2col(out1), preferred_element_type=jnp.float32)
    out2 = inorm(acc2, g2, be2, relu=False, zero_pad_lanes=False)

    # identity shortcut (stride == 1) + final ReLU.  Pad lanes hold don't-care
    # values and are cropped by the wrapper.
    out_ref[...] = jnp.maximum(out2 + x, 0.0).astype(out_ref.dtype)


def res_basic_forward(x_nchw, params, images_per_step=8):
    """ResBasic forward.  x_nchw: (N, C, H, W) float32 -> (N, C, H, W)."""
    w1, b1, g1, be1, w2, b2, g2, be2 = params
    del b1, b2      # pre-InstanceNorm conv biases are cancelled by the mean
    N, Cin, H, W = x_nchw.shape
    Cout = w1.shape[0]
    assert Cin == Cout, "stride==1 identity shortcut requires Cin == Cout"

    Cp = _round_up(max(Cin, Cout), CH_ALIGN)
    Hp, Wp = H + 2, W + 2
    L = Hp * Wp
    Lp = _round_up(L, 128)

    # Images per grid step.  Keep grid >= 2 so 'parallel' can shard the batch
    # across both v7x TensorCores; larger NB amortizes per-step overhead on
    # v5e/v6e.  TODO(synk): on v7x at full nnDet map sizes prefer NB=1 + H-tiling.
    NB = 1
    for cand in range(min(images_per_step, N), 0, -1):
        if N % cand == 0 and (N // cand >= 2 or N == 1):
            NB = cand
            break
    T = NB * Lp

    # Input: pad channels, zero-pad spatially, flatten the plane, pad lanes to a
    # multiple of 128, then channels-major so lanes run over (image, plane).
    x_p = jnp.pad(x_nchw.astype(jnp.float32),
                  ((0, 0), (0, Cp - Cin), (1, 1), (1, 1)))
    x_flat = jnp.pad(x_p.reshape(N, Cp, L), ((0, 0), (0, 0), (0, Lp - L)))
    x_cl = jnp.transpose(x_flat, (1, 0, 2)).reshape(Cp, N * Lp)

    # Conv weights: (Cout,Cin,3,3) -> (Cp, KH, KW, Cp) -> (Cp, 9*Cp), bf16.
    # Contraction index k = (kh*KW + kw)*Cp + ci matches the im2col tap order.
    def prep_w(w):
        wp = jnp.pad(w, ((0, Cp - w.shape[0]), (0, Cp - w.shape[1]),
                         (0, 0), (0, 0)))
        return (jnp.transpose(wp, (0, 2, 3, 1))
                .reshape(Cp, KH * KW * Cp).astype(MXU_DTYPE))

    def prep_c(v):      # per-channel gamma / beta -> (Cp, 1) f32 (pads are zero)
        return jnp.pad(v.astype(jnp.float32), (0, Cp - v.shape[0])).reshape(Cp, 1)

    w1_m, w2_m = prep_w(w1), prep_w(w2)
    g1_c, be1_c, g2_c, be2_c = map(prep_c, (g1, be1, g2, be2))

    # Validity mask of one padded-flat plane (1.0 on the H*W interior lanes).
    ll = jnp.arange(Lp)
    r, c = ll // Wp, ll % Wp
    mask = (((ll < L) & (r >= 1) & (r <= H) & (c >= 1) & (c <= W))
            .astype(jnp.float32).reshape(1, Lp))

    kernel = functools.partial(_res_basic_kernel, H=H, W=W, Wp=Wp, Lp=Lp, NB=NB)

    out_flat = pl.pallas_call(
        kernel,
        out_shape=jax.ShapeDtypeStruct((Cp, N * Lp), x_nchw.dtype),
        grid_spec=pltpu.PrefetchScalarGridSpec(
            num_scalar_prefetch=0,
            grid=(N // NB,),
            in_specs=[
                pl.BlockSpec((Cp, T), lambda i: (0, i)),              # input slab
                pl.BlockSpec((Cp, KH * KW * Cp), lambda i: (0, 0)),   # w1 (bf16)
                pl.BlockSpec((Cp, 1), lambda i: (0, 0)),              # gamma1
                pl.BlockSpec((Cp, 1), lambda i: (0, 0)),              # beta1
                pl.BlockSpec((Cp, KH * KW * Cp), lambda i: (0, 0)),   # w2 (bf16)
                pl.BlockSpec((Cp, 1), lambda i: (0, 0)),              # gamma2
                pl.BlockSpec((Cp, 1), lambda i: (0, 0)),              # beta2
                pl.BlockSpec((1, Lp), lambda i: (0, 0)),              # valid mask
            ],
            out_specs=pl.BlockSpec((Cp, T), lambda i: (0, i)),        # lane-dense
        ),
        compiler_params=pltpu.CompilerParams(
            dimension_semantics=("parallel",),     # batch axis -> 2 TCs on v7x
            vmem_limit_bytes=48 * 1024 * 1024,     # fits v7x 64 MiB; raise on v5e/v6e
        ),
    )(x_cl, w1_m, g1_c, be1_c, w2_m, g2_c, be2_c, mask)

    # (Cp, N*Lp) -> crop channel / lane padding -> NCHW (wrapper-side plumbing).
    out = out_flat.reshape(Cp, N, Lp)[:Cout, :, :L]
    out = jnp.transpose(out, (1, 0, 2)).reshape(N, Cout, Hp, Wp)
    return out[:, :, 1:-1, 1:-1]


def res_basic_reference(x, params):
    """Pure-JAX f32 reference matching the PyTorch forward (NCHW)."""
    w1, b1, g1, be1, w2, b2, g2, be2 = params

    def conv(x, w, b):
        y = lax.conv_general_dilated(
            x, w, window_strides=(1, 1), padding=((1, 1), (1, 1)),
            dimension_numbers=("NCHW", "OIHW", "NCHW"))
        return y + b[None, :, None, None]

    def inorm(x, g, be):
        m = jnp.mean(x, axis=(2, 3), keepdims=True)
        v = jnp.mean((x - m) ** 2, axis=(2, 3), keepdims=True)
        return (x - m) * lax.rsqrt(v + EPS) * g[None, :, None, None] \
            + be[None, :, None, None]

    out = jnp.maximum(inorm(conv(x, w1, b1), g1, be1), 0.0)   # conv1 (+ReLU)
    out = inorm(conv(out, w2, b2), g2, be2)                   # conv2 (no ReLU)
    out = out + x                                             # identity shortcut
    return jnp.maximum(out, 0.0)                              # final ReLU


if __name__ == "__main__":
    N, C, H, W = 2, 4, 16, 16
    key = jax.random.PRNGKey(0)
    k = jax.random.split(key, 5)

    x = jax.random.normal(k[0], (N, C, H, W), jnp.float32)
    w1 = jax.random.normal(k[1], (C, C, KH, KW), jnp.float32) * 0.1
    b1 = jax.random.normal(k[2], (C,), jnp.float32) * 0.1
    w2 = jax.random.normal(k[3], (C, C, KH, KW), jnp.float32) * 0.1
    b2 = jax.random.normal(k[4], (C,), jnp.float32) * 0.1
    g1 = jnp.ones((C,), jnp.float32)     # InstanceNorm default affine weight
    be1 = jnp.zeros((C,), jnp.float32)
    g2 = jnp.zeros((C,), jnp.float32)    # zero-init of conv2.norm.weight
    be2 = jnp.zeros((C,), jnp.float32)
    params = (w1, b1, g1, be1, w2, b2, g2, be2)

    # Check 1: the module exactly as initialized (gamma2 == 0 makes the output
    # relu(x) independent of MXU precision) -> tight tolerance.
    out = jax.block_until_ready(res_basic_forward(x, params))
    ref = res_basic_reference(x, params)
    assert out.shape == (N, C, H, W)
    assert jnp.allclose(out, ref, atol=1e-5, rtol=1e-5), \
        float(jnp.max(jnp.abs(out - ref)))

    # Check 2: non-zero gamma2/beta2 and non-trivial conv biases so the full
    # conv2 + norm2 path and the bias-cancellation argument are exercised.
    # Tolerance reflects bf16 MXU operands (norm / residual math is f32).
    params2 = (w1, b1, g1, jnp.full((C,), 0.2, jnp.float32), w2, b2,
               jnp.full((C,), 0.5, jnp.float32), jnp.full((C,), 0.1, jnp.float32))
    out2 = jax.block_until_ready(res_basic_forward(x, params2))
    ref2 = res_basic_reference(x, params2)
    assert jnp.allclose(out2, ref2, atol=5e-2, rtol=5e-2), \
        float(jnp.max(jnp.abs(out2 - ref2)))

    print("KERNEL_OK")
</pallas_src>

<mosaic_0001>
module attributes {stable_mosaic.version = 11 : i64} {
  func.func @_res_basic_kernel(%arg0: i32, %arg1: memref<8x384xf32, #tpu.memory_space<vmem>>, %arg2: memref<8x72xbf16, #tpu.memory_space<vmem>>, %arg3: memref<8x1xf32, #tpu.memory_space<vmem>>, %arg4: memref<8x1xf32, #tpu.memory_space<vmem>>, %arg5: memref<8x72xbf16, #tpu.memory_space<vmem>>, %arg6: memref<8x1xf32, #tpu.memory_space<vmem>>, %arg7: memref<8x1xf32, #tpu.memory_space<vmem>>, %arg8: memref<1x384xf32, #tpu.memory_space<vmem>>, %arg9: memref<8x384xf32, #tpu.memory_space<vmem>>) attributes {dimension_semantics = [#tpu.dimension_semantics<parallel>], iteration_bounds = array<i64: 2>, scalar_prefetch = 0 : i64, scratch_operands = 0 : i64, tpu.core_type = #tpu.core_type<tc>, window_params = [{transform_indices = @transform_0, window_bounds = array<i64: 8, 384>}, {pipeline_mode = #tpu.pipeline_mode<synchronous>, transform_indices = @transform_1, window_bounds = array<i64: 8, 72>}, {pipeline_mode = #tpu.pipeline_mode<synchronous>, transform_indices = @transform_2, window_bounds = array<i64: 8, 1>}, {pipeline_mode = #tpu.pipeline_mode<synchronous>, transform_indices = @transform_3, window_bounds = array<i64: 8, 1>}, {pipeline_mode = #tpu.pipeline_mode<synchronous>, transform_indices = @transform_4, window_bounds = array<i64: 8, 72>}, {pipeline_mode = #tpu.pipeline_mode<synchronous>, transform_indices = @transform_5, window_bounds = array<i64: 8, 1>}, {pipeline_mode = #tpu.pipeline_mode<synchronous>, transform_indices = @transform_6, window_bounds = array<i64: 8, 1>}, {pipeline_mode = #tpu.pipeline_mode<synchronous>, transform_indices = @transform_7, window_bounds = array<i64: 1, 384>}, {transform_indices = @transform_8, window_bounds = array<i64: 8, 384>}]} {
    %c0 = arith.constant 0 : index
    %c0_0 = arith.constant 0 : index
    %0 = vector.load %arg1[%c0, %c0_0] : memref<8x384xf32, #tpu.memory_space<vmem>>, vector<8x384xf32>
    %c0_1 = arith.constant 0 : index
    %c0_2 = arith.constant 0 : index
    %1 = vector.load %arg8[%c0_1, %c0_2] : memref<1x384xf32, #tpu.memory_space<vmem>>, vector<1x384xf32>
    %c0_3 = arith.constant 0 : index
    %c0_4 = arith.constant 0 : index
    %2 = vector.load %arg2[%c0_3, %c0_4] : memref<8x72xbf16, #tpu.memory_space<vmem>>, vector<8x72xbf16>
    %c0_5 = arith.constant 0 : index
    %c0_6 = arith.constant 0 : index
    %3 = vector.load %arg5[%c0_5, %c0_6] : memref<8x72xbf16, #tpu.memory_space<vmem>>, vector<8x72xbf16>
    %c0_7 = arith.constant 0 : index
    %c0_8 = arith.constant 0 : index
    %4 = vector.load %arg3[%c0_7, %c0_8] : memref<8x1xf32, #tpu.memory_space<vmem>>, vector<8x1xf32>
    %c0_9 = arith.constant 0 : index
    %c0_10 = arith.constant 0 : index
    %5 = vector.load %arg4[%c0_9, %c0_10] : memref<8x1xf32, #tpu.memory_space<vmem>>, vector<8x1xf32>
    %c0_11 = arith.constant 0 : index
    %c0_12 = arith.constant 0 : index
    %6 = vector.load %arg6[%c0_11, %c0_12] : memref<8x1xf32, #tpu.memory_space<vmem>>, vector<8x1xf32>
    %c0_13 = arith.constant 0 : index
    %c0_14 = arith.constant 0 : index
    %7 = vector.load %arg7[%c0_13, %c0_14] : memref<8x1xf32, #tpu.memory_space<vmem>>, vector<8x1xf32>
    %c19_i32 = arith.constant 19 : i32
    %8 = tpu.dynamic_rotate %0 by %c19_i32 dim 1 : vector<8x384xf32>, i32 -> vector<8x384xf32>
    %c18_i32 = arith.constant 18 : i32
    %9 = tpu.dynamic_rotate %0 by %c18_i32 dim 1 : vector<8x384xf32>, i32 -> vector<8x384xf32>
    %c17_i32 = arith.constant 17 : i32
    %10 = tpu.dynamic_rotate %0 by %c17_i32 dim 1 : vector<8x384xf32>, i32 -> vector<8x384xf32>
    %c1_i32 = arith.constant 1 : i32
    %11 = tpu.dynamic_rotate %0 by %c1_i32 dim 1 : vector<8x384xf32>, i32 -> vector<8x384xf32>
    %c383_i32 = arith.constant 383 : i32
    %12 = tpu.dynamic_rotate %0 by %c383_i32 dim 1 : vector<8x384xf32>, i32 -> vector<8x384xf32>
    %c367_i32 = arith.constant 367 : i32
    %13 = tpu.dynamic_rotate %0 by %c367_i32 dim 1 : vector<8x384xf32>, i32 -> vector<8x384xf32>
    %c366_i32 = arith.constant 366 : i32
    %14 = tpu.dynamic_rotate %0 by %c366_i32 dim 1 : vector<8x384xf32>, i32 -> vector<8x384xf32>
    %c365_i32 = arith.constant 365 : i32
    %15 = tpu.dynamic_rotate %0 by %c365_i32 dim 1 : vector<8x384xf32>, i32 -> vector<8x384xf32>
    %16 = tpu.concatenate %8, %9, %10, %11, %0, %12, %13, %14, %15 in 0 : vector<8x384xf32>, vector<8x384xf32>, vector<8x384xf32>, vector<8x384xf32>, vector<8x384xf32>, vector<8x384xf32>, vector<8x384xf32>, vector<8x384xf32>, vector<8x384xf32> -> vector<72x384xf32>
    %17 = arith.truncf %16 : vector<72x384xf32> to vector<72x384xbf16>
    %cst = arith.constant dense<0.000000e+00> : vector<8x384xf32>
    %18 = tpu.matmul %2, %17, %cst {dimension_numbers = #tpu.dot_dimension_numbers<[1], [0], [0], [1], [0, 0, 1, 1], [], []>} : vector<8x72xbf16>, vector<72x384xbf16>, vector<8x384xf32> -> vector<8x384xf32>
    %19 = vector.broadcast %1 : vector<1x384xf32> to vector<8x384xf32>
    %20 = arith.mulf %18, %19 : vector<8x384xf32>
    %cst_15 = arith.constant dense<0.000000e+00> : vector<8xf32>
    %21 = vector.multi_reduction <add>, %20, %cst_15 [1] : vector<8x384xf32> to vector<8xf32>
    %22 = vector.shape_cast %21 : vector<8xf32> to vector<8x1xf32>
    %cst_16 = arith.constant 3.906250e-03 : f32
    %23 = vector.broadcast %cst_16 : f32 to vector<8x1xf32>
    %24 = arith.mulf %22, %23 : vector<8x1xf32>
    %25 = vector.broadcast %24 : vector<8x1xf32> to vector<8x384xf32>
    %26 = arith.subf %18, %25 : vector<8x384xf32>
    %27 = vector.broadcast %1 : vector<1x384xf32> to vector<8x384xf32>
    %28 = arith.mulf %26, %27 : vector<8x384xf32>
    %29 = arith.mulf %28, %28 : vector<8x384xf32>
    %cst_17 = arith.constant dense<0.000000e+00> : vector<8xf32>
    %30 = vector.multi_reduction <add>, %29, %cst_17 [1] : vector<8x384xf32> to vector<8xf32>
    %31 = vector.shape_cast %30 : vector<8xf32> to vector<8x1xf32>
    %cst_18 = arith.constant 3.906250e-03 : f32
    %32 = vector.broadcast %cst_18 : f32 to vector<8x1xf32>
    %33 = arith.mulf %31, %32 : vector<8x1xf32>
    %cst_19 = arith.constant 9.99999974E-6 : f32
    %34 = vector.broadcast %cst_19 : f32 to vector<8x1xf32>
    %35 = arith.addf %33, %34 : vector<8x1xf32>
    %36 = math.rsqrt %35 : vector<8x1xf32>
    %37 = arith.mulf %36, %4 : vector<8x1xf32>
    %38 = vector.broadcast %37 : vector<8x1xf32> to vector<8x384xf32>
    %39 = arith.mulf %26, %38 : vector<8x384xf32>
    %40 = vector.broadcast %5 : vector<8x1xf32> to vector<8x384xf32>
    %41 = arith.addf %39, %40 : vector<8x384xf32>
    %cst_20 = arith.constant 0.000000e+00 : f32
    %42 = vector.broadcast %cst_20 : f32 to vector<8x384xf32>
    %43 = arith.maximumf %41, %42 : vector<8x384xf32>
    %44 = vector.broadcast %1 : vector<1x384xf32> to vector<8x384xf32>
    %45 = arith.mulf %43, %44 : vector<8x384xf32>
    %c19_i32_21 = arith.constant 19 : i32
    %46 = tpu.dynamic_rotate %45 by %c19_i32_21 dim 1 : vector<8x384xf32>, i32 -> vector<8x384xf32>
    %c18_i32_22 = arith.constant 18 : i32
    %47 = tpu.dynamic_rotate %45 by %c18_i32_22 dim 1 : vector<8x384xf32>, i32 -> vector<8x384xf32>
    %c17_i32_23 = arith.constant 17 : i32
    %48 = tpu.dynamic_rotate %45 by %c17_i32_23 dim 1 : vector<8x384xf32>, i32 -> vector<8x384xf32>
    %c1_i32_24 = arith.constant 1 : i32
    %49 = tpu.dynamic_rotate %45 by %c1_i32_24 dim 1 : vector<8x384xf32>, i32 -> vector<8x384xf32>
    %c383_i32_25 = arith.constant 383 : i32
    %50 = tpu.dynamic_rotate %45 by %c383_i32_25 dim 1 : vector<8x384xf32>, i32 -> vector<8x384xf32>
    %c367_i32_26 = arith.constant 367 : i32
    %51 = tpu.dynamic_rotate %45 by %c367_i32_26 dim 1 : vector<8x384xf32>, i32 -> vector<8x384xf32>
    %c366_i32_27 = arith.constant 366 : i32
    %52 = tpu.dynamic_rotate %45 by %c366_i32_27 dim 1 : vector<8x384xf32>, i32 -> vector<8x384xf32>
    %c365_i32_28 = arith.constant 365 : i32
    %53 = tpu.dynamic_rotate %45 by %c365_i32_28 dim 1 : vector<8x384xf32>, i32 -> vector<8x384xf32>
    %54 = tpu.concatenate %46, %47, %48, %49, %45, %50, %51, %52, %53 in 0 : vector<8x384xf32>, vector<8x384xf32>, vector<8x384xf32>, vector<8x384xf32>, vector<8x384xf32>, vector<8x384xf32>, vector<8x384xf32>, vector<8x384xf32>, vector<8x384xf32> -> vector<72x384xf32>
    %55 = arith.truncf %54 : vector<72x384xf32> to vector<72x384xbf16>
    %cst_29 = arith.constant dense<0.000000e+00> : vector<8x384xf32>
    %56 = tpu.matmul %3, %55, %cst_29 {dimension_numbers = #tpu.dot_dimension_numbers<[1], [0], [0], [1], [0, 0, 1, 1], [], []>} : vector<8x72xbf16>, vector<72x384xbf16>, vector<8x384xf32> -> vector<8x384xf32>
    %57 = vector.broadcast %1 : vector<1x384xf32> to vector<8x384xf32>
    %58 = arith.mulf %56, %57 : vector<8x384xf32>
    %cst_30 = arith.constant dense<0.000000e+00> : vector<8xf32>
    %59 = vector.multi_reduction <add>, %58, %cst_30 [1] : vector<8x384xf32> to vector<8xf32>
    %60 = vector.shape_cast %59 : vector<8xf32> to vector<8x1xf32>
    %cst_31 = arith.constant 3.906250e-03 : f32
    %61 = vector.broadcast %cst_31 : f32 to vector<8x1xf32>
    %62 = arith.mulf %60, %61 : vector<8x1xf32>
    %63 = vector.broadcast %62 : vector<8x1xf32> to vector<8x384xf32>
    %64 = arith.subf %56, %63 : vector<8x384xf32>
    %65 = vector.broadcast %1 : vector<1x384xf32> to vector<8x384xf32>
    %66 = arith.mulf %64, %65 : vector<8x384xf32>
    %67 = arith.mulf %66, %66 : vector<8x384xf32>
    %cst_32 = arith.constant dense<0.000000e+00> : vector<8xf32>
    %68 = vector.multi_reduction <add>, %67, %cst_32 [1] : vector<8x384xf32> to vector<8xf32>
    %69 = vector.shape_cast %68 : vector<8xf32> to vector<8x1xf32>
    %cst_33 = arith.constant 3.906250e-03 : f32
    %70 = vector.broadcast %cst_33 : f32 to vector<8x1xf32>
    %71 = arith.mulf %69, %70 : vector<8x1xf32>
    %cst_34 = arith.constant 9.99999974E-6 : f32
    %72 = vector.broadcast %cst_34 : f32 to vector<8x1xf32>
    %73 = arith.addf %71, %72 : vector<8x1xf32>
    %74 = math.rsqrt %73 : vector<8x1xf32>
    %75 = arith.mulf %74, %6 : vector<8x1xf32>
    %76 = vector.broadcast %75 : vector<8x1xf32> to vector<8x384xf32>
    %77 = arith.mulf %64, %76 : vector<8x384xf32>
    %78 = vector.broadcast %7 : vector<8x1xf32> to vector<8x384xf32>
    %79 = arith.addf %77, %78 : vector<8x384xf32>
    %80 = arith.addf %79, %0 : vector<8x384xf32>
    %cst_35 = arith.constant 0.000000e+00 : f32
    %81 = vector.broadcast %cst_35 : f32 to vector<8x384xf32>
    %82 = arith.maximumf %80, %81 : vector<8x384xf32>
    %c0_36 = arith.constant 0 : index
    %c0_37 = arith.constant 0 : index
    %83 = vector.load %arg9[%c0_36, %c0_37] : memref<8x384xf32, #tpu.memory_space<vmem>>, vector<8x384xf32>
    tpu.vector_store %arg9[%c0_36, %c0_37], %82 {strides = array<i32>} : memref<8x384xf32, #tpu.memory_space<vmem>>, vector<8x384xf32>,
    return
  }
  func.func @transform_0(%arg0: i32) -> (i32, i32) {
    %c0_i32 = arith.constant 0 : i32
    %c0_i32_0 = arith.constant 0 : i32
    return %c0_i32, %arg0 : i32, i32
  }
  func.func @transform_1(%arg0: i32) -> (i32, i32) {
    %c0_i32 = arith.constant 0 : i32
    %c0_i32_0 = arith.constant 0 : i32
    %c0_i32_1 = arith.constant 0 : i32
    return %c0_i32, %c0_i32_0 : i32, i32
  }
  func.func @transform_2(%arg0: i32) -> (i32, i32) {
    %c0_i32 = arith.constant 0 : i32
    %c0_i32_0 = arith.constant 0 : i32
    %c0_i32_1 = arith.constant 0 : i32
    return %c0_i32, %c0_i32_0 : i32, i32
  }
  func.func @transform_3(%arg0: i32) -> (i32, i32) {
    %c0_i32 = arith.constant 0 : i32
    %c0_i32_0 = arith.constant 0 : i32
    %c0_i32_1 = arith.constant 0 : i32
    return %c0_i32, %c0_i32_0 : i32, i32
  }
  func.func @transform_4(%arg0: i32) -> (i32, i32) {
    %c0_i32 = arith.constant 0 : i32
    %c0_i32_0 = arith.constant 0 : i32
    %c0_i32_1 = arith.constant 0 : i32
    return %c0_i32, %c0_i32_0 : i32, i32
  }
  func.func @transform_5(%arg0: i32) -> (i32, i32) {
    %c0_i32 = arith.constant 0 : i32
    %c0_i32_0 = arith.constant 0 : i32
    %c0_i32_1 = arith.constant 0 : i32
    return %c0_i32, %c0_i32_0 : i32, i32
  }
  func.func @transform_6(%arg0: i32) -> (i32, i32) {
    %c0_i32 = arith.constant 0 : i32
    %c0_i32_0 = arith.constant 0 : i32
    %c0_i32_1 = arith.constant 0 : i32
    return %c0_i32, %c0_i32_0 : i32, i32
  }
  func.func @transform_7(%arg0: i32) -> (i32, i32) {
    %c0_i32 = arith.constant 0 : i32
    %c0_i32_0 = arith.constant 0 : i32
    %c0_i32_1 = arith.constant 0 : i32
    return %c0_i32, %c0_i32_0 : i32, i32
  }
  func.func @transform_8(%arg0: i32) -> (i32, i32) {
    %c0_i32 = arith.constant 0 : i32
    %c0_i32_0 = arith.constant 0 : i32
    return %c0_i32, %arg0 : i32, i32
  }
}

</mosaic_0001>

<bundles_post_ra>
// kernel: tpu_custom_call.1
= control target key start
LH: loop header
LB: loop body
LE: loop exit
PB: predicated region body
PF: predicated region fallthrough
CT: control target
= control target key end

     0   :  { %13 = vsyncpa [#allocation3], 0  ;;  %s1658_s0 = inlined_call_operand.hbm [shape: f32[8,768], index: 0, kind: input, shape index: {}]   ;;  %s1659_s1 = inlined_call_operand.vmem [shape: bf16[8,72], index: 1, kind: input, shape index: {}]   ;;  %s1660_s2 = inlined_call_operand.vmem [shape: f32[8,1], index: 2, kind: input, shape index: {}]   ;;  %s1661_s3 = inlined_call_operand.vmem [shape: f32[8,1], index: 3, kind: input, shape index: {}]   ;;  %s1662_s4 = inlined_call_operand.vmem [shape: bf16[8,72], index: 4, kind: input, shape index: {}]   ;;  %s1663_s5 = inlined_call_operand.vmem [shape: f32[8,1], index: 5, kind: input, shape index: {}]   ;;  %s1664_s6 = inlined_call_operand.vmem [shape: f32[8,1], index: 6, kind: input, shape index: {}]   ;;  %s1665_s7 = inlined_call_operand.vmem [shape: f32[1,384], index: 7, kind: input, shape index: {}]   ;;  %s1666_s8 = inlined_call_operand.hbm [shape: f32[8,768], index: 8, kind: output, shape index: {}]  }
   0x1   :  { %15 = vsyncpa [#allocation3 + $0x1], 0 }
   0x2   :  { %16 = vsyncpa [#allocation4], 0 }
   0x3   :  { %18 = vsyncpa [#allocation4 + $0x1], 0  ;;  %s1258_s27 = smov 0   ;;  %s1260_s28 = smov 0  }
   0x4   :  { %s1262_s29 = smov 0   ;;  %s1264_s30 = smov 0  }
   0x5 LB: > { %1670 = sst [smem:[#allocation8_spill]] %s1194_s29  ;;  %s1279_s9 = sadd.s32 4294967295, %s1198_s30   ;;  %s1198_s30 = sphi %s1264_s30, %s1686_s30   ;;  %s1194_s29 = sphi %s1262_s29, %s1683_s29   ;;  %s1190_s28 = sphi %s1260_s28, %s1685_s28   ;;  %s1186_s27 = sphi %s1258_s27, %s1684_s27  }
   0x6   : > { %s905_s10 = sadd.s32 4294967294, %s1198_s30   ;;  %s1283_s11 = sadd.s32 1, %s1198_s30  }
   0x7   : > { %s31_s12 = sadd.s32 1, %s1194_s29  ;;  %s28_s13 = ssub.s32 %s1198_s30, %s1283_s11 }
   0x8   : > { %p38_p0 = scmp.ne.s32.totalorder %s1194_s29, %s1190_s28  ;;  %p29_p1 = scmp.eq.s32.totalorder %s28_s13, 0 }
   0x9   : > { %p39_p2 = scmp.eq.s32.totalorder %s1198_s30, 0  ;;  %p44_p3 = scmp.ne.s32.totalorder %s1190_s28, %s1186_s27 }
   0xa   : > { %p45_p4 = scmp.eq.s32.totalorder %s1279_s9, 0  ;;  %p215_p7 = scmp.eq.s32.totalorder %s1279_s9, 1 }
   0xb   : > { %s1295_s14 = scalar_select %p29_p1, %s1194_s29, %s31_s12  }
   0xc   : > { %p40_p5 = por %p39_p2, %p38_p0  ;;  %p1297_p6 = por %p45_p4, %p44_p3 }
   0xd   : > { %1671 = sst [smem:[#allocation9_spill]] %s1295_s14  ;;  %p221_p8 = scmp.eq.s32.totalorder %s905_s10, 1 }
   0xe   : > { %s1672_s15 = scalar_select %p1297_p6, 1, 0 }
   0xf   : > { %p975_p10 = scmp.lt.s32.totalorder %s1198_s30, 2  ;;  %p1304_p11 = por %p215_p7, %p38_p0 }
  0x10   : > { %p1308_p12 = por %p221_p8, %p44_p3  ;;  %s262_s18 = sand.u32 1, %s1194_s29  }
  0x11   : > { %s1673_s16 = scalar_select %p1304_p11, 1, 0 }
  0x12   : > { %s1674_s17 = scalar_select %p1308_p12, 1, 0 }
  0x13   : > { %s919_s19 = smul.u32 384, %s1198_s30  ;;  %p1319_p13 = pnand %p975_p10, %p40_p5 }
  0x14   : > { %s961_s20 = smul.u32 24, %s262_s18  ;;  %s263_s10 = scalar_lea.sflag [#allocation3], %s262_s18 }
  0x15   : > { %s1317_s23 = scalar_lea.hbm %s1658_s0, %s919_s19  ;;  %p1108_p3 = pneg %p1319_p13 }
  0x16   : > { %s266_s25 = scalar_lea.vmem [#allocation2], %s961_s20  ;;  %s1106_s12 = scalar_lea.hbm %s1317_s23, 384 }
  0x17   : > { %s274_s26 = sshll.u32 %s266_s25, 4  ;;  %p1107_p2 = scmp.ne.s32.totalorder %s1317_s23, %s1106_s12  ;;  %s275_s26 = int_to_ptr.vmem [resolvable:$true] %s274_s26 }
  0x18   : > { %s1111_s21 = scalar_lea.hbm %s1658_s0, 768  ;;  %p1112_p5 = scmp.lt.s32.totalorder %s1317_s23, %s1658_s0 }
  0x19   : > { %p1109_p4 = pnand %p1108_p3, %p1107_p2  ;;  %p1113_p8 = scmp.lt.s32.totalorder %s1111_s21, %s1106_s12 }
  0x1b   : > { %p1110_p7 = pneg %p1109_p4  ;;  %p1114_p10 = por %p1113_p8, %p1112_p5 }
  0x1d   : > { %p1115_p9 = pnand %p1114_p10, %p1110_p7 }
  0x1f   : > { %1118 = shalt.err (!%p1115_p9)
}
  0x20   : > { %s1119_s20 = scalar_lea.vmem %s275_s26, 384  ;;  %s1200_s18 = smov [#allocation2]  }
  0x21   : > { %p1120_p0 = scmp.ne.s32.totalorder %s275_s26, %s1119_s20  ;;  %s1124_s25 = sshll.u32 %s1200_s18, 4  ;;  %s1125_s25 = int_to_ptr.vmem [resolvable:$false] %s1124_s25 }
  0x22   : > { %s1126_s29 = scalar_lea.vmem %s1125_s25, 768  ;;  %p1127_p2 = scmp.lt.s32.totalorder %s275_s26, %s1125_s25 }
  0x23   : > { %p1122_p1 = pnand %p1120_p0, %p1108_p3  ;;  %p1128_p4 = scmp.lt.s32.totalorder %s1126_s29, %s1119_s20 }
  0x25   : > { %p1123_p12 = pneg %p1122_p1  ;;  %p1129_p11 = por %p1128_p4, %p1127_p2 }
  0x27   : > { %p1130_p6 = pnand %p1129_p11, %p1123_p12 }
  0x29   : > { %1133 = shalt.err (!%p1130_p6)
}
  0x2a   : > { %970 = dma.hbm_to_vmem [thread:$0]  (!%p1319_p13), %s1317_s23, 384, %s275_s26, %s263_s10  }
  0x2b   : > { %p1676_p9 = scmp.lt.s32.totalorder %s1198_s30, 3  ;;  %p1677_p7 = scmp.ge.s32.totalorder %s1198_s30, 1 }
  0x2d   : > { %p280_p5 = pnand %p1677_p7, %p1676_p9 }
  0x2e   : > { %s1344_s14 = sand.u32 (!%p280_p5), 1, %s1190_s28   ;;  %p1678_p6 = scmp.ne.s32.totalorder (!%p280_p5), %s1672_s15, 0 }
  0x2f   : > { %283 = sbr.rel (%p280_p5) target bundleno = 1665 (0x681), region = 52  ;;  %s286_s12 = scalar_lea.sflag (!%p280_p5), [#allocation3], %s1344_s14 }
  0x30   : > { %s962_s29 = smul.u32 (!%p280_p5), 24, %s1344_s14 }
  0x32   : > { %s289_s13 = scalar_lea.vmem (!%p280_p5), [#allocation2], %s962_s29 }
  0x34   : > { %1177 = dma.done.wait (%p1678_p6), %s286_s12, 384  }
  0x35   : > { %1179 = vsyncadd (%p1678_p6), %s286_s12, 4294966912  ;;  %v1201_v0 = vmov 0.0   ;;  %v1355_v1 = vld [vmem:[%s289_s13 + $0x8] sm:$0xff]  ;;  %v1357_v2 = vld [vmem:[%s289_s13 + $0x10] sm:$0xff]  ;;  %s1202_s23 = smov 111   ;;  %s1203_s15 = smov 109   ;;  %v341_v7 = vlaneseq }
  0x36   : > { %933 = vmatprep.subr.bf16.mxu1 %v1201_v0  ;;  %v1359_v3 = vld [vmem:[%s289_s13] sm:$0xff]  ;;  %v1025_v4 = vpack.i.bf16 %v1357_v2, %v1355_v1  ;;  %s1204_s24 = smov 110   ;;  %s1205_s26 = smov 127   ;;  %v1208_v6 = vmov 0   ;;  %vm1209_vm0 = vmmov 0   ;;  %vm436_vm4 = vcmask 1043456  }
  0x37   : > { %v1020_v5 = vpack.i.bf16 %v1355_v1, %v1359_v3  ;;  %s1206_s10 = smov 1   ;;  %s1207_s19 = smov 17   ;;  %478 = vmatprep.mubr.bf16.mxu0 %v1208_v6  ;;  %943 = vmatprep.mubr.msk.bf16.mxu1 %vm1209_vm0, %v1201_v0  ;;  %v1395_v8 = vand.u32 127, %v341_v7  ;;  %vm432_vm10 = vcmask 588800  }
  0x38   : > { %1026 = vrot.lane.b32.xlu1 %v1025_v4, %s1202_s23  ;;  %1060 = vset.pattern.permute.xlu0 %v1208_v6  ;;  %s1210_s21 = smov 18   ;;  %s1211_s22 = smov 19  }
  0x39   : > { %1021 = vrot.lane.b32.xlu0 %v1020_v5, %s1203_s15  ;;  %1061 = vset.pattern.permute.xlu1 %v1208_v6  ;;  %vm413_vm1 = vcmp.lt.s32.totalorder %v1395_v8, 109  ;;  %vm403_vm2 = vcmp.lt.s32.totalorder %v1395_v8, 110  ;;  %vm393_vm3 = vcmp.lt.s32.totalorder %v1395_v8, 111  ;;  %vm383_vm5 = vcmp.lt.s32.totalorder %v1395_v8, 127  ;;  %p1679_p12 = scmp.ne.s32.totalorder %s1673_s16, 0  ;;  %s1212_s25 = smov [#allocation5]  }
  0x3a   : > { %vm373_vm6 = vcmp.lt.s32.totalorder %v1395_v8, 1  ;;  %vm363_vm7 = vcmp.lt.s32.totalorder %v1395_v8, 17  ;;  %vm353_vm8 = vcmp.lt.s32.totalorder %v1395_v8, 18  ;;  %vm343_vm9 = vcmp.lt.s32.totalorder %v1395_v8, 19 }
  0x3c   : > { %1031 = vrot.lane.b32.xlu1 %v1025_v4, %s1204_s24 }
  0x3d   : > { %411 = vrot.lane.b32.xlu0 %v1357_v2, %s1203_s15 }
  0x40   : > { %397 = vrot.lane.b32.xlu1 %v1359_v3, %s1204_s24 }
  0x41   : > { %387 = vrot.lane.b32.xlu0 %v1359_v3, %s1202_s23 }
  0x44   : > { %377 = vrot.lane.b32.xlu1 %v1359_v3, %s1205_s26 }
  0x45   : > { %1036 = vrot.lane.b32.xlu0 %v1025_v4, %s1205_s26 }
  0x48   : > { %1046 = vrot.lane.b32.xlu1 %v1020_v5, %s1206_s10 }
  0x49   : > { %1041 = vrot.lane.b32.xlu0 %v1020_v5, %s1207_s19 }
  0x4c   : > { %371 = vrot.lane.b32.xlu1 %v1357_v2, %s1206_s10 }
  0x4d   : > { %361 = vrot.lane.b32.xlu0 %v1357_v2, %s1207_s19 }
  0x50   : > { %1056 = vrot.lane.b32.xlu1 %v1020_v5, %s1210_s21 }
  0x51   : > { %1051 = vrot.lane.b32.xlu0 %v1020_v5, %s1211_s22 }
  0x54   : > { %351 = vrot.lane.b32.xlu1 %v1357_v2, %s1210_s21 }
  0x55   : > { %339 = vrot.lane.b32.xlu0 %v1357_v2, %s1211_s22 }
  0xaa   : > { %v1027_v9 = vpop.permute.xlu1 %1026 }
  0xab   : > { %v1022_v10 = vpop.permute.xlu0 %1021  ;;  %v1029_v13 = vunpack.i.h.bf16 %v1027_v9  ;;  %v1028_v14 = vunpack.i.l.bf16 %v1027_v9 }
  0xac   : > { %v1024_v11 = vunpack.i.h.bf16 %v1022_v10  ;;  %v1023_v12 = vunpack.i.l.bf16 %v1022_v10 }
  0xad   : > { %v394_v25 = vsel %vm393_vm3, %v1028_v14, %v1029_v13 }
  0xae   : > { %v415_v15 = vsel %vm413_vm1, %v1023_v12, %v1024_v11  ;;  %v1032_v16 = vpop.permute.xlu1 %1031 }
  0xaf   : > { %v412_v17 = vpop.permute.xlu0 %411  ;;  %v429_v18 = vpack.c.bf16 %v415_v15, %v415_v15  ;;  %v1034_v19 = vunpack.i.h.bf16 %v1032_v16  ;;  %v1033_v20 = vunpack.i.l.bf16 %v1032_v16 }
  0xb0   : > { %v416_v21 = vsel %vm413_vm1, %v412_v17, %v1023_v12  ;;  %v414_v22 = vsel %vm413_vm1, %v1024_v11, %v412_v17 }
  0xb1   : > { %v431_v23 = vpack.c.bf16 %v416_v21, %v416_v21  ;;  %v430_v24 = vpack.c.bf16 %v414_v22, %v414_v22  ;;  %v404_v26 = vsel %vm403_vm2, %v1033_v20, %v1034_v19  ;;  %v438_v29 = vsel %vm436_vm4, %v429_v18, 0 }
  0xb2   : > { %v398_v27 = vpop.permute.xlu1 %397  ;;  %v427_v31 = vpack.c.bf16 %v404_v26, %v394_v25  ;;  %v329_v25 = vld [vmem:[%s1659_s1] sm:$0xf]  ;;  %v529_v26 = vshrl.u32 %v341_v7, 7 }
  0xb3   : > { %v388_v28 = vpop.permute.xlu0 %387  ;;  %910 = vmatprep.subr.msk.bf16.mxu0 %vm436_vm4, %v430_v24  ;;  %v444_v30 = vsel %vm436_vm4, %v431_v23, 0  ;;  %v405_v32 = vsel %vm403_vm2, %v398_v27, %v1033_v20  ;;  %v406_v33 = vsel %vm403_vm2, %v1034_v19, %v398_v27 }
  0xb4   : > { %v395_v34 = vsel %vm393_vm3, %v388_v28, %v1028_v14  ;;  %v396_v35 = vsel %vm393_vm3, %v1029_v13, %v388_v28  ;;  %453 = vmatpush1.bf16.msra.mxu0 %v438_v29  ;;  %934 = vmatpush3.bf16.msra.mxu1 %v444_v30  ;;  %v530_v27 = vsub.s32 0, %v529_v26  ;;  %v538_v28 = vsub.s32 2, %v529_v26  ;;  %v328_v30 = vld [vmem:[%s1665_s7] sm:$0x7] }
  0xb5   : > { %v426_v36 = vpack.c.bf16 %v405_v32, %v395_v34  ;;  %v428_v37 = vpack.c.bf16 %v406_v33, %v396_v35  ;;  %454 = vmatprep.subr.bf16.mxu0 %v427_v31  ;;  %935 = vmatprep.subr.bf16.mxu1 %v1201_v0  ;;  %v534_v29 = vsub.s32 1, %v529_v26 }
  0xb6   : > { %v378_v38 = vpop.permute.xlu1 %377  ;;  %v1476_v31 = vrot.slane %v328_v30, %v530_v27  ;;  %v1478_v32 = vrot.slane %v328_v30, %v538_v28 }
  0xb7   : > { %v1037_v39 = vpop.permute.xlu0 %1036  ;;  %v1480_v33 = vrot.slane %v328_v30, %v534_v29 }
  0xb8   : > { %v1039_v40 = vunpack.i.h.bf16 %v1037_v39  ;;  %v1038_v41 = vunpack.i.l.bf16 %v1037_v39  ;;  %455 = vmatpush1.bf16.msra.mxu0 %v426_v36  ;;  %936 = vmatpush3.bf16.msra.mxu1 %v428_v37 }
  0xb9   : > { %937 = vmatprep.subr.bf16.mxu1 %v1201_v0 }
  0xba   : > { %v384_v42 = vsel %vm383_vm5, %v1038_v41, %v1039_v40  ;;  %v386_v43 = vsel %vm383_vm5, %v1039_v40, %v378_v38  ;;  %v385_v44 = vsel %vm383_vm5, %v378_v38, %v1038_v41  ;;  %v1047_v45 = vpop.permute.xlu1 %1046 }
  0xbb   : > { %v1042_v46 = vpop.permute.xlu0 %1041  ;;  %v424_v47 = vpack.c.bf16 %v384_v42, %v1355_v1  ;;  %v425_v48 = vpack.c.bf16 %v386_v43, %v1357_v2  ;;  %v423_v49 = vpack.c.bf16 %v385_v44, %v1359_v3  ;;  %v1049_v50 = vunpack.i.h.bf16 %v1047_v45 }
  0xbc   : > { %v1048_v51 = vunpack.i.l.bf16 %v1047_v45  ;;  %v1044_v52 = vunpack.i.h.bf16 %v1042_v46  ;;  %v1043_v53 = vunpack.i.l.bf16 %v1042_v46 }
  0xbd   : > { %456 = vmatprep.subr.bf16.mxu0 %v424_v47  ;;  %938 = vmatpush3.bf16.msra.mxu1 %v425_v48 }
  0xbe   : > { %457 = vmatpush1.bf16.msra.mxu0 %v423_v49  ;;  %v365_v54 = vsel %vm363_vm7, %v1043_v53, %v1044_v52  ;;  %v375_v55 = vsel %vm373_vm6, %v1048_v51, %v1049_v50  ;;  %939 = vmatprep.subr.bf16.mxu1 %v1201_v0  ;;  %v372_v56 = vpop.permute.xlu1 %371 }
  0xbf   : > { %v362_v57 = vpop.permute.xlu0 %361  ;;  %v421_v58 = vpack.c.bf16 %v375_v55, %v365_v54  ;;  %v374_v59 = vsel %vm373_vm6, %v1049_v50, %v372_v56  ;;  %v376_v60 = vsel %vm373_vm6, %v372_v56, %v1048_v51 }
  0xc0   : > { %v364_v61 = vsel %vm363_vm7, %v1044_v52, %v362_v57  ;;  %v366_v62 = vsel %vm363_vm7, %v362_v57, %v1043_v53 }
  0xc1   : > { %v420_v63 = vpack.c.bf16 %v376_v60, %v366_v62  ;;  %v422_v4 = vpack.c.bf16 %v374_v59, %v364_v61  ;;  %458 = vmatprep.subr.bf16.mxu0 %v421_v58  ;;  %v332_v58 = vld [vmem:[%s1661_s3] sm:$0xff] }
  0xc2   : > { %v1057_v5 = vpop.permute.xlu1 %1056  ;;  %v331_v62 = vld [vmem:[%s1660_s2] sm:$0xff] }
  0xc3   : > { %v1052_v9 = vpop.permute.xlu0 %1051  ;;  %459 = vmatpush1.bf16.msra.mxu0 %v420_v63  ;;  %940 = vmatpush3.bf16.msra.mxu1 %v422_v4  ;;  %v1059_v10 = vunpack.i.h.bf16 %v1057_v5  ;;  %v1058_v11 = vunpack.i.l.bf16 %v1057_v5 }
  0xc4   : > { %v1054_v12 = vunpack.i.h.bf16 %v1052_v9  ;;  %v1053_v13 = vunpack.i.l.bf16 %v1052_v9  ;;  %941 = vmatprep.subr.bf16.mxu1 %v1201_v0 }
  0xc5   : > { %v355_v15 = vsel %vm353_vm8, %v1058_v11, %v1059_v10 }
  0xc6   : > { %v345_v14 = vsel %vm343_vm9, %v1053_v13, %v1054_v12  ;;  %v352_v16 = vpop.permute.xlu1 %351 }
  0xc7   : > { %v340_v17 = vpop.permute.xlu0 %339  ;;  %v418_v18 = vpack.c.bf16 %v355_v15, %v345_v14  ;;  %v354_v19 = vsel %vm353_vm8, %v1059_v10, %v352_v16  ;;  %v356_v20 = vsel %vm353_vm8, %v352_v16, %v1058_v11 }
  0xc8   : > { %v344_v21 = vsel %vm343_vm9, %v1054_v12, %v340_v17  ;;  %v346_v22 = vsel %vm343_vm9, %v340_v17, %v1053_v13 }
  0xc9   : > { %v417_v23 = vpack.c.bf16 %v356_v20, %v346_v22  ;;  %v419_v24 = vpack.c.bf16 %v354_v19, %v344_v21  ;;  %460 = vmatprep.subr.bf16.mxu0 %v418_v18 }
  0xcb   : > { %461 = vmatpush1.bf16.msra.mxu0 %v417_v23  ;;  %942 = vmatpush3.bf16.msra.mxu1 %v419_v24 }
  0xcc   : > { %947 = vmatprep.subr.bf16.mxu1 %v1201_v0 }
  0xce   : > { %911 = vmatmul.mubr.msk.bf16.vlgmr.msra.gmra.mxu0 %vm432_vm10, %v329_v25  ;;  %944 = vmatmul.mubr.msk.bf16.vlgmr.msra.gmra.mxu1 %vm432_vm10, %v329_v25 }
  0xcf   : > { %721 = vmatprep.mubr.bf16.mxu0 %v1208_v6  ;;  %957 = vmatprep.mubr.msk.bf16.mxu1 %vm1209_vm0, %v1201_v0 }
 0x18e   : > { %v480_v34 = vpop.f32.mrf.mxu0  ;;  %v521_v6 = vpop.f32.mrf.mxu1 }
 0x18f   : > { %v543_v37 = vmul.f32 %v1476_v31, %v480_v34  ;;  %v545_v7 = vmul.f32 %v1478_v32, %v521_v6 }
 0x190   : > { %v482_v35 = vpop.f32.mrf.mxu0  ;;  %v945_v36 = vpop.f32.mrf.mxu1 }
 0x191   : > { %v544_v38 = vmul.f32 %v1480_v33, %v482_v35 }
 0x192   : > { %v484_v39 = vpop.f32.mrf.mxu0  ;;  %v524_v40 = vpop.f32.mrf.mxu1 }
 0x193   : > { %v546_v41 = vadd.f32 %v544_v38, %v543_v37 }
 0x194   : > { %v485_v42 = vpop.f32.mrf.mxu0  ;;  %v946_v43 = vpop.f32.mrf.mxu1 }
 0x195   : > { %v547_v44 = vadd.f32 %v546_v41, %v545_v7 }
 0x197   : > { %548 = vadd.xlane.f32.xlu0 %v547_v44 }
 0x220   : > { %v549_v45 = vpop.xlane.xlu0 %548 }
 0x221   : > { %v550_v46 = vmul.f32 0.00390625, %v549_v45 }
 0x223   : > { %v551_v47 = vsub.f32 %v480_v34, %v550_v46  ;;  %v552_v48 = vsub.f32 %v482_v35, %v550_v46  ;;  %v553_v49 = vsub.f32 %v521_v6, %v550_v46 }
 0x225   : > { %v554_v50 = vmul.f32 %v551_v47, %v1476_v31  ;;  %v555_v51 = vmul.f32 %v552_v48, %v1480_v33  ;;  %v556_v52 = vmul.f32 %v553_v49, %v1478_v32 }
 0x227   : > { %v557_v53 = vmul.f32 %v554_v50, %v554_v50  ;;  %v558_v54 = vmul.f32 %v555_v51, %v555_v51  ;;  %v559_v55 = vmul.f32 %v556_v52, %v556_v52 }
 0x229   : > { %v560_v56 = vadd.f32 %v558_v54, %v557_v53 }
 0x22b   : > { %v561_v57 = vadd.f32 %v560_v56, %v559_v55 }
 0x22d   : > { %562 = vadd.xlane.f32.xlu1 %v561_v57 }
 0x23e   : > { %578 = vperm.xlu1 %1061, %v332_v58  }
 0x2b6   : > { %v563_v59 = vpop.xlane.xlu1 %562 }
 0x2b7   : > { %v564_v60 = vmul.f32 0.00390625, %v563_v59 }
 0x2b9   : > { %v565_v61 = vadd.f32 1e-05, %v564_v60 }
 0x2ba   : > { %v579_v9 = vpop.permute.xlu1 %578 }
 0x2bb   : > { %1102 = vrsqrt.f32 %v565_v61 }
 0x2c8   : > { %v1103_v63 = vpop.eup %1102 }
 0x2c9   : > { %v567_v4 = vmul.f32 %v1103_v63, %v331_v62 }
 0x2cb   : > { %570 = vperm.xlu0 %1060, %v567_v4  }
 0x346   : > { %v571_v5 = vpop.permute.xlu0 %570 }
 0x347   : > { %v573_v10 = vmul.f32 %v571_v5, %v551_v47  ;;  %v574_v11 = vmul.f32 %v571_v5, %v552_v48  ;;  %v575_v12 = vmul.f32 %v571_v5, %v553_v49 }
 0x349   : > { %v581_v13 = vadd.f32 %v579_v9, %v573_v10  ;;  %v582_v14 = vadd.f32 %v579_v9, %v574_v11  ;;  %v583_v15 = vadd.f32 %v579_v9, %v575_v12 }
 0x34b   : > { %v584_v16 = vmax.f32 %v581_v13, 0.0  ;;  %v585_v17 = vmax.f32 %v582_v14, 0.0  ;;  %v586_v18 = vmax.f32 %v583_v15, 0.0 }
 0x34d   : > { %v1495_v19 = vmul.f32 %v584_v16, %v1476_v31  ;;  %v1498_v20 = vmul.f32 %v585_v17, %v1480_v33  ;;  %v1501_v21 = vmul.f32 %v586_v18, %v1478_v32 }
 0x34f   : > { %v1077_v22 = vpack.i.bf16 %v1501_v21, %v1498_v20  ;;  %v1062_v23 = vpack.i.bf16 %v1498_v20, %v1495_v19 }
 0x351   : > { %1078 = vrot.lane.b32.xlu0 %v1077_v22, %s1205_s26  ;;  %1063 = vrot.lane.b32.xlu1 %v1062_v23, %s1203_s15 }
 0x355   : > { %1083 = vrot.lane.b32.xlu0 %v1062_v23, %s1207_s19  ;;  %657 = vrot.lane.b32.xlu1 %v1501_v21, %s1203_s15 }
 0x359   : > { %612 = vrot.lane.b32.xlu0 %v1501_v21, %s1207_s19  ;;  %1068 = vrot.lane.b32.xlu1 %v1077_v22, %s1202_s23 }
 0x35d   : > { %1093 = vrot.lane.b32.xlu0 %v1062_v23, %s1211_s22  ;;  %1073 = vrot.lane.b32.xlu1 %v1077_v22, %s1204_s24 }
 0x361   : > { %594 = vrot.lane.b32.xlu0 %v1501_v21, %s1211_s22  ;;  %635 = vrot.lane.b32.xlu1 %v1495_v19, %s1202_s23  ;;  %s321_s22 = scalar_lea.vmem [#allocation5], %s962_s29  ;;  %s1138_s23 = sshll.u32 %s1212_s25, 4  ;;  %s1139_s23 = int_to_ptr.vmem [resolvable:$false] %s1138_s23 }
 0x362   : > { %s835_s12 = sshll.u32 %s321_s22, 4  ;;  %s1140_s15 = scalar_lea.vmem %s1139_s23, 768  ;;  %s1617_s12 = int_to_ptr.vmem [resolvable:$true] %s835_s12 }
 0x363   : > { %s1134_s29 = scalar_lea.vmem %s1617_s12, 384  ;;  %p1141_p1 = scmp.lt.s32.totalorder %s1617_s12, %s1139_s23 }
 0x364   : > { %p1135_p11 = scmp.ne.s32.totalorder %s1617_s12, %s1134_s29  ;;  %p1142_p3 = scmp.lt.s32.totalorder %s1140_s15, %s1134_s29 }
 0x365   : > { %644 = vrot.lane.b32.xlu1 %v1495_v19, %s1204_s24 }
 0x366   : > { %p1136_p13 = pnand %p1135_p11, %p1679_p12  ;;  %p1143_p8 = por %p1142_p3, %p1141_p1 }
 0x368   : > { %p1137_p0 = pneg %p1136_p13 }
 0x369   : > { %626 = vrot.lane.b32.xlu1 %v1495_v19, %s1205_s26 }
 0x36a   : > { %p1144_p10 = pnand %p1143_p8, %p1137_p0 }
 0x36d   : > { %1088 = vrot.lane.b32.xlu1 %v1062_v23, %s1206_s10 }
 0x371   : > { %621 = vrot.lane.b32.xlu1 %v1501_v21, %s1206_s10 }
 0x375   : > { %1098 = vrot.lane.b32.xlu1 %v1062_v23, %s1210_s21 }
 0x379   : > { %603 = vrot.lane.b32.xlu1 %v1501_v21, %s1210_s21  ;;  %s920_s21 = smul.u32 384, %s1279_s9  ;;  %s821_s9 = scalar_lea.sflag [#allocation4], %s1344_s14 }
 0x37b   : > { %s1615_s18 = scalar_lea.hbm %s1666_s8, %s920_s21 }
 0x3c3   : > { %v1064_v24 = vpop.permute.xlu1 %1063  ;;  %v1079_v41 = vpop.permute.xlu0 %1078 }
 0x3c4   : > { %v1066_v25 = vunpack.i.h.bf16 %v1064_v24  ;;  %v1065_v26 = vunpack.i.l.bf16 %v1064_v24  ;;  %v1081_v46 = vunpack.i.h.bf16 %v1079_v41  ;;  %v1080_v47 = vunpack.i.l.bf16 %v1079_v41  ;;  %v330_v41 = vld [vmem:[%s1662_s4] sm:$0xf] }
 0x3c6   : > { %v660_v27 = vsel %vm413_vm1, %v1065_v26, %v1066_v25  ;;  %v632_v52 = vsel %vm383_vm5, %v1080_v47, %v1081_v46 }
 0x3c7   : > { %v658_v28 = vpop.permute.xlu1 %657  ;;  %v674_v29 = vpack.c.bf16 %v660_v27, %v660_v27  ;;  %v1084_v50 = vpop.permute.xlu0 %1083  ;;  %v669_v59 = vpack.c.bf16 %v632_v52, %v1498_v20 }
 0x3c8   : > { %v659_v30 = vsel %vm413_vm1, %v1066_v25, %v658_v28  ;;  %v661_v34 = vsel %vm413_vm1, %v658_v28, %v1065_v26  ;;  %v1086_v9 = vunpack.i.h.bf16 %v1084_v50  ;;  %v1085_v10 = vunpack.i.l.bf16 %v1084_v50 }
 0x3c9   : > { %v675_v6 = vpack.c.bf16 %v659_v30, %v659_v30  ;;  %v676_v35 = vpack.c.bf16 %v661_v34, %v661_v34  ;;  %v681_v37 = vsel %vm436_vm4, %v674_v29, 0 }
 0x3ca   : > { %v615_v14 = vsel %vm363_vm7, %v1085_v10, %v1086_v9 }
 0x3cb   : > { %v1069_v36 = vpop.permute.xlu1 %1068  ;;  %913 = vmatprep.subr.msk.bf16.mxu0 %vm436_vm4, %v675_v6  ;;  %v687_v7 = vsel %vm436_vm4, %v676_v35, 0  ;;  %v613_v63 = vpop.permute.xlu0 %612 }
 0x3cc   : > { %696 = vmatpush1.bf16.msra.mxu0 %v681_v37  ;;  %948 = vmatpush3.bf16.msra.mxu1 %v687_v7  ;;  %v1071_v38 = vunpack.i.h.bf16 %v1069_v36  ;;  %v1070_v39 = vunpack.i.l.bf16 %v1069_v36  ;;  %v616_v20 = vsel %vm363_vm7, %v613_v63, %v1085_v10  ;;  %v334_v10 = vld [vmem:[%s1664_s6] sm:$0xff] }
 0x3cd   : > { %949 = vmatprep.subr.bf16.mxu1 %v1201_v0 }
 0x3ce   : > { %v641_v44 = vsel %vm393_vm3, %v1070_v39, %v1071_v38 }
 0x3cf   : > { %v1074_v40 = vpop.permute.xlu1 %1073  ;;  %v1094_v16 = vpop.permute.xlu0 %1093 }
 0x3d0   : > { %v1076_v42 = vunpack.i.h.bf16 %v1074_v40  ;;  %v1075_v43 = vunpack.i.l.bf16 %v1074_v40  ;;  %v1096_v25 = vunpack.i.h.bf16 %v1094_v16  ;;  %v1095_v26 = vunpack.i.l.bf16 %v1094_v16 }
 0x3d2   : > { %v650_v45 = vsel %vm403_vm2, %v1075_v43, %v1076_v42  ;;  %v597_v34 = vsel %vm343_vm9, %v1095_v26, %v1096_v25 }
 0x3d3   : > { %v636_v48 = vpop.permute.xlu1 %635  ;;  %v672_v49 = vpack.c.bf16 %v650_v45, %v641_v44  ;;  %v595_v30 = vpop.permute.xlu0 %594 }
 0x3d4   : > { %v642_v53 = vsel %vm393_vm3, %v636_v48, %v1070_v39  ;;  %v643_v54 = vsel %vm393_vm3, %v1071_v38, %v636_v48  ;;  %v596_v37 = vsel %vm343_vm9, %v1096_v25, %v595_v30  ;;  %v598_v7 = vsel %vm343_vm9, %v595_v30, %v1095_v26 }
 0x3d5   : > { %697 = vmatprep.subr.bf16.mxu0 %v672_v49 }
 0x3d7   : > { %v645_v51 = vpop.permute.xlu1 %644 }
 0x3d8   : > { %v651_v55 = vsel %vm403_vm2, %v645_v51, %v1075_v43  ;;  %v652_v56 = vsel %vm403_vm2, %v1076_v42, %v645_v51 }
 0x3d9   : > { %v671_v57 = vpack.c.bf16 %v651_v55, %v642_v53  ;;  %v673_v58 = vpack.c.bf16 %v652_v56, %v643_v54 }
 0x3db   : > { %v627_v60 = vpop.permute.xlu1 %626  ;;  %698 = vmatpush1.bf16.msra.mxu0 %v671_v57  ;;  %950 = vmatpush3.bf16.msra.mxu1 %v673_v58 }
 0x3dc   : > { %v633_v61 = vsel %vm383_vm5, %v627_v60, %v1080_v47  ;;  %v634_v62 = vsel %vm383_vm5, %v1081_v46, %v627_v60  ;;  %699 = vmatprep.subr.bf16.mxu0 %v669_v59  ;;  %951 = vmatprep.subr.bf16.mxu1 %v1201_v0 }
 0x3dd   : > { %v668_v4 = vpack.c.bf16 %v633_v61, %v1495_v19  ;;  %v670_v5 = vpack.c.bf16 %v634_v62, %v1501_v21  ;;  %v614_v19 = vsel %vm363_vm7, %v1086_v9, %v613_v63 }
 0x3df   : > { %v1089_v11 = vpop.permute.xlu1 %1088  ;;  %700 = vmatpush1.bf16.msra.mxu0 %v668_v4  ;;  %952 = vmatpush3.bf16.msra.mxu1 %v670_v5 }
 0x3e0   : > { %v1091_v12 = vunpack.i.h.bf16 %v1089_v11  ;;  %v1090_v13 = vunpack.i.l.bf16 %v1089_v11  ;;  %953 = vmatprep.subr.bf16.mxu1 %v1201_v0 }
 0x3e2   : > { %v624_v15 = vsel %vm373_vm6, %v1090_v13, %v1091_v12 }
 0x3e3   : > { %v622_v17 = vpop.permute.xlu1 %621  ;;  %v666_v18 = vpack.c.bf16 %v624_v15, %v615_v14 }
 0x3e4   : > { %v623_v21 = vsel %vm373_vm6, %v1091_v12, %v622_v17  ;;  %v625_v22 = vsel %vm373_vm6, %v622_v17, %v1090_v13 }
 0x3e5   : > { %v665_v23 = vpack.c.bf16 %v625_v22, %v616_v20  ;;  %v667_v24 = vpack.c.bf16 %v623_v21, %v614_v19  ;;  %701 = vmatprep.subr.bf16.mxu0 %v666_v18 }
 0x3e7   : > { %v1099_v27 = vpop.permute.xlu1 %1098  ;;  %702 = vmatpush1.bf16.msra.mxu0 %v665_v23  ;;  %954 = vmatpush3.bf16.msra.mxu1 %v667_v24 }
 0x3e8   : > { %v1101_v28 = vunpack.i.h.bf16 %v1099_v27  ;;  %v1100_v29 = vunpack.i.l.bf16 %v1099_v27  ;;  %955 = vmatprep.subr.bf16.mxu1 %v1201_v0 }
 0x3ea   : > { %v606_v6 = vsel %vm353_vm8, %v1100_v29, %v1101_v28 }
 0x3eb   : > { %v604_v35 = vpop.permute.xlu1 %603  ;;  %v663_v36 = vpack.c.bf16 %v606_v6, %v597_v34 }
 0x3ec   : > { %v605_v38 = vsel %vm353_vm8, %v1101_v28, %v604_v35  ;;  %v607_v0 = vsel %vm353_vm8, %v604_v35, %v1100_v29 }
 0x3ed   : > { %v662_v39 = vpack.c.bf16 %v607_v0, %v598_v7  ;;  %v664_v40 = vpack.c.bf16 %v605_v38, %v596_v37  ;;  %703 = vmatprep.subr.bf16.mxu0 %v663_v36 }
 0x3ef   : > { %704 = vmatpush1.bf16.msra.mxu0 %v662_v39  ;;  %956 = vmatpush3.bf16.msra.mxu1 %v664_v40 }
 0x3f2   : > { %914 = vmatmul.mubr.msk.bf16.vlgmr.msra.gmra.mxu0 %vm432_vm10, %v330_v41  ;;  %958 = vmatmul.mubr.msk.bf16.vlgmr.msra.gmra.mxu1 %vm432_vm10, %v330_v41 }
 0x4b2   : > { %v723_v42 = vpop.f32.mrf.mxu0  ;;  %v764_v43 = vpop.f32.mrf.mxu1 }
 0x4b3   : > { %v770_v8 = vmul.f32 %v723_v42, %v1476_v31  ;;  %v772_v46 = vmul.f32 %v764_v43, %v1478_v32 }
 0x4b4   : > { %v725_v44 = vpop.f32.mrf.mxu0  ;;  %v959_v45 = vpop.f32.mrf.mxu1 }
 0x4b5   : > { %v771_v47 = vmul.f32 %v725_v44, %v1480_v33 }
 0x4b6   : > { %v727_v48 = vpop.f32.mrf.mxu0  ;;  %v767_v49 = vpop.f32.mrf.mxu1 }
 0x4b7   : > { %v773_v50 = vadd.f32 %v771_v47, %v770_v8 }
 0x4b8   : > { %v728_v51 = vpop.f32.mrf.mxu0  ;;  %v960_v52 = vpop.f32.mrf.mxu1 }
 0x4b9   : > { %v774_v53 = vadd.f32 %v773_v50, %v772_v46 }
 0x4bb   : > { %775 = vadd.xlane.f32.xlu0 %v774_v53 }
 0x544   : > { %v776_v54 = vpop.xlane.xlu0 %775 }
 0x545   : > { %v777_v55 = vmul.f32 0.00390625, %v776_v54 }
 0x547   : > { %v778_v56 = vsub.f32 %v723_v42, %v777_v55  ;;  %v779_v57 = vsub.f32 %v725_v44, %v777_v55  ;;  %v780_v58 = vsub.f32 %v764_v43, %v777_v55 }
 0x549   : > { %v781_v59 = vmul.f32 %v778_v56, %v1476_v31  ;;  %v782_v60 = vmul.f32 %v779_v57, %v1480_v33  ;;  %v783_v61 = vmul.f32 %v780_v58, %v1478_v32  ;;  %v333_v32 = vld [vmem:[%s1663_s5] sm:$0xff] }
 0x54b   : > { %v784_v62 = vmul.f32 %v781_v59, %v781_v59  ;;  %v785_v63 = vmul.f32 %v782_v60, %v782_v60  ;;  %v786_v4 = vmul.f32 %v783_v61, %v783_v61 }
 0x54d   : > { %v787_v5 = vadd.f32 %v785_v63, %v784_v62 }
 0x54f   : > { %v788_v9 = vadd.f32 %v787_v5, %v786_v4 }
 0x551   : > { %789 = vadd.xlane.f32.xlu1 %v788_v9 }
 0x562   : > { %805 = vperm.xlu1 %1061, %v334_v10  }
 0x5da   : > { %v790_v11 = vpop.xlane.xlu1 %789 }
 0x5db   : > { %v791_v12 = vmul.f32 0.00390625, %v790_v11 }
 0x5dd   : > { %v792_v31 = vadd.f32 1e-05, %v791_v12 }
 0x5de   : > { %v806_v18 = vpop.permute.xlu1 %805 }
 0x5df   : > { %1104 = vrsqrt.f32 %v792_v31 }
 0x5ec   : > { %v1105_v33 = vpop.eup %1104 }
 0x5ed   : > { %v794_v13 = vmul.f32 %v1105_v33, %v333_v32 }
 0x5ef   : > { %797 = vperm.xlu0 %1060, %v794_v13  }
 0x66a   : > { %v798_v14 = vpop.permute.xlu0 %797 }
 0x66b   : > { %v800_v15 = vmul.f32 %v798_v14, %v778_v56  ;;  %v801_v16 = vmul.f32 %v798_v14, %v779_v57  ;;  %v802_v17 = vmul.f32 %v798_v14, %v780_v58 }
 0x66d   : > { %v808_v19 = vadd.f32 %v806_v18, %v800_v15  ;;  %v809_v20 = vadd.f32 %v806_v18, %v801_v16  ;;  %v810_v21 = vadd.f32 %v806_v18, %v802_v17 }
 0x66f   : > { %v811_v22 = vadd.f32 %v808_v19, %v1359_v3  ;;  %v812_v23 = vadd.f32 %v809_v20, %v1355_v1  ;;  %v813_v24 = vadd.f32 %v810_v21, %v1357_v2 }
 0x671   : > { %v814_v25 = vmax.f32 %v811_v22, 0.0  ;;  %v815_v26 = vmax.f32 %v812_v23, 0.0  ;;  %v816_v27 = vmax.f32 %v813_v24, 0.0 }
 0x673   : > { %817 = vst [vmem:[%s321_s22] sm:$0xff] %v814_v25  ;;  %818 = vst [vmem:[%s321_s22 + $0x8] sm:$0xff] %v815_v26 }
 0x674   : > { %819 = vst [vmem:[%s321_s22 + $0x10] sm:$0xff] %v816_v27 }
 0x675   : > { %1147 = shalt.err (!%p1144_p10)
}
 0x676   : > { %s1148_s24 = scalar_lea.hbm %s1615_s18, 384  ;;  %s1152_s10 = scalar_lea.hbm %s1666_s8, 768 }
 0x677   : > { %p1149_p2 = scmp.ne.s32.totalorder %s1615_s18, %s1148_s24  ;;  %p1153_p7 = scmp.lt.s32.totalorder %s1615_s18, %s1666_s8 }
 0x678   : > { %p1154_p5 = scmp.lt.s32.totalorder %s1152_s10, %s1148_s24 }
 0x679   : > { %p1150_p4 = pnand %p1149_p2, %p1679_p12 }
 0x67a   : > { %p1155_p6 = por %p1154_p5, %p1153_p7 }
 0x67b   : > { %p1151_p9 = pneg %p1150_p4 }
 0x67d   : > { %p1156_p11 = pnand %p1155_p6, %p1151_p9 }
 0x67f   : > { %1159 = shalt.err (!%p1156_p11)
}
 0x680   : > { %965 = dma.vmem_to_hbm [thread:$0]  (%p1679_p12), %s1617_s12, 384, %s1615_s18, %s821_s9  }
 0x681 PF: > { %s847_s22 = sand.u32 1, %s1186_s27   ;;  %p1680_p13 = scmp.ne.s32.totalorder %s1674_s17, 0 }
 0x682   : > { %p1681_p0 = scmp.ge.s32.totalorder %s1198_s30, 2  ;;  %s848_s13 = scalar_lea.sflag [#allocation4], %s847_s22 }
 0x684   : > { %p972_p1 = pnand %p1681_p0, %p1680_p13 }
 0x686   : > { %p973_p3 = pneg %p972_p1 }
 0x688   : > { %1181 = dma.done.wait (%p973_p3), %s848_s13, 384  }
 0x689   : > { %1183 = vsyncadd (%p973_p3), %s848_s13, 4294966912  ;;  %s1682_s20 = sld [smem:[#allocation8_spill]]  ;;  %p21_p8 = scmp.ge.s32.totalorder %s1283_s11, 4  }
 0x68a   : > { %s1683_s29 = sld [smem:[#allocation9_spill]]  ;;  %s1684_s27 = smov %s1190_s28 }
 0x68b   : > { %s1686_s30 = smov %s1283_s11  ;;  %23 = sbr.rel (!%p21_p8) target bundleno = 5 (0x5), region = 97 }
 0x68f   : > { %s1685_s28 = smov %s1682_s20 }
 0x690   :  { %853 = vsyncpa [#allocation3], 1 }
 0x691   :  { %855 = vsyncpa [#allocation3 + $0x1], 1 }
 0x692   :  { %856 = vsyncpa [#allocation4], 1 }
 0x693   :  { %858 = vsyncpa [#allocation4 + $0x1], 1 }

</bundles_post_ra>
